<compile_context>
chip_gen: v7x
topology: tpu7x:2x2x1
jax: 0.10.0
libtpu: 0.0.40
codegen_flags: <defaults>
</compile_context>

<pallas_src>
import jax
import jax.numpy as jnp
from jax.experimental import pallas as pl
from jax.experimental.pallas import tpu as pltpu

D_MODEL = 256
MASK_KERNELS_DIM = 8     # output_dim of instance_kernels_head


def _round_up(n, m):
    return ((n + m - 1) // m) * m


def _mlp_kernel(x_ref, w1_ref, b1_ref, w2_ref, b2_ref, o_ref):
    # x_ref : (tm, 256)  f32/bf16    w1_ref: (256, 256) bf16   b1_ref: (1, 256) f32
    # w2_ref: (256, 8)   bf16        b2_ref: (1, 8)     f32    o_ref : (tm, 8) f32
    x = x_ref[...].astype(jnp.bfloat16)                      # cast rides VPU under DMA/MXU
    h = jnp.dot(x, w1_ref[...], preferred_element_type=jnp.float32)
    h = jnp.maximum(h + b1_ref[...], 0.0)                    # bias + ReLU in f32 (VPU)
    y = jnp.dot(h.astype(jnp.bfloat16), w2_ref[...],
                preferred_element_type=jnp.float32)
    o_ref[...] = (y + b2_ref[...]).astype(o_ref.dtype)


def prepare_params(params):
    """One-time weight prep: bf16 MXU weights, f32 biases shaped (1, K)."""
    w1, b1, w2, b2 = params
    return (w1.astype(jnp.bfloat16),
            b1.reshape(1, D_MODEL).astype(jnp.float32),
            w2.astype(jnp.bfloat16),
            b2.reshape(1, MASK_KERNELS_DIM).astype(jnp.float32))


def mmvn_forward(samples, prepared_params, *, tm=1024):
    """samples: (B, S, 256) f32 or bf16 -> (B, S, 8) f32 (instance mask kernels)."""
    w1_bf, b1, w2_bf, b2 = prepared_params
    B, S, D = samples.shape
    assert D == D_MODEL
    x = samples.reshape(B * S, D)
    N = x.shape[0]

    # Row tile: single minimally-padded tile for small N; for larger N cap the
    # tile so the grid has >= 2 steps (lets v7x shard rows across its 2 TCs).
    n_rows = _round_up(N, 8)
    if n_rows <= tm:
        tm_eff = n_rows
    else:
        tm_eff = min(tm, _round_up(pl.cdiv(n_rows, 2), 128))
    n_pad = _round_up(N, tm_eff)
    if n_pad != N:
        x = jnp.pad(x, ((0, n_pad - N), (0, 0)))

    out = pl.pallas_call(
        _mlp_kernel,
        out_shape=jax.ShapeDtypeStruct((n_pad, MASK_KERNELS_DIM), jnp.float32),
        grid_spec=pl.GridSpec(
            grid=(n_pad // tm_eff,),
            in_specs=[
                pl.BlockSpec((tm_eff, D_MODEL), lambda i: (i, 0)),             # x tile (streamed)
                pl.BlockSpec((D_MODEL, D_MODEL), lambda i: (0, 0)),            # W1 (resident)
                pl.BlockSpec((1, D_MODEL), lambda i: (0, 0)),                  # b1 (resident)
                pl.BlockSpec((D_MODEL, MASK_KERNELS_DIM), lambda i: (0, 0)),   # W2 (resident)
                pl.BlockSpec((1, MASK_KERNELS_DIM), lambda i: (0, 0)),         # b2 (resident)
            ],
            out_specs=pl.BlockSpec((tm_eff, MASK_KERNELS_DIM), lambda i: (i, 0)),
        ),
        compiler_params=pltpu.CompilerParams(
            dimension_semantics=("parallel",)),
    )(x, w1_bf, b1, w2_bf, b2)

    # Strip row padding (padded rows hold relu(b1)@W2+b2 garbage), restore (B, S, 8).
    return out[:N].reshape(B, S, MASK_KERNELS_DIM)


def init_params(key):
    """Deterministic init matching nn.Linear shapes: layer1 256->256, layer2 256->8.
    PyTorch stores weight as (out, in); we store (in, out) for x @ W."""
    k1, k2, k3, k4 = jax.random.split(key, 4)
    bound1 = 1.0 / jnp.sqrt(D_MODEL)
    w1 = jax.random.uniform(k1, (D_MODEL, D_MODEL), jnp.float32, -bound1, bound1)
    b1 = jax.random.uniform(k2, (1, D_MODEL), jnp.float32, -bound1, bound1)
    bound2 = 1.0 / jnp.sqrt(D_MODEL)
    w2 = jax.random.uniform(k3, (D_MODEL, MASK_KERNELS_DIM), jnp.float32, -bound2, bound2)
    b2 = jax.random.uniform(k4, (1, MASK_KERNELS_DIM), jnp.float32, -bound2, bound2)
    return w1, b1, w2, b2


def _reference(samples, params):
    """Pure-JAX reference using the same bf16-operand / f32-accumulate numerics
    as the kernel (matches PyTorch structure: Linear -> ReLU -> Linear)."""
    w1, b1, w2, b2 = params
    x = samples.astype(jnp.bfloat16)
    h = jnp.dot(x, w1.astype(jnp.bfloat16), preferred_element_type=jnp.float32)
    h = jnp.maximum(h + b1[0], 0.0)
    y = jnp.dot(h.astype(jnp.bfloat16), w2.astype(jnp.bfloat16),
                preferred_element_type=jnp.float32)
    return y + b2[0]


if __name__ == "__main__":
    key = jax.random.PRNGKey(0)
    kp, kx = jax.random.split(key)
    params = init_params(kp)
    prepared = prepare_params(params)   # one-time: bf16 weights, (1,K) biases

    # samples: (batch=2, num_queries=8, d_model=256) — decoder query features
    # (valid_indices / text_queries are unused by this module's forward)
    samples = jax.random.normal(kx, (2, 8, D_MODEL), jnp.float32)

    out = mmvn_forward(samples, prepared)
    out = jax.block_until_ready(out)

    ref = _reference(samples, params)
    assert out.shape == (2, 8, MASK_KERNELS_DIM)
    assert jnp.allclose(out, ref, atol=1e-3, rtol=1e-3), "mismatch vs pure-JAX reference"

    print("KERNEL_OK")
</pallas_src>

<mosaic_0001>
module attributes {stable_mosaic.version = 11 : i64} {
  func.func @_mlp_kernel(%arg0: i32, %arg1: memref<16x256xf32, #tpu.memory_space<vmem>>, %arg2: memref<256x256xbf16, #tpu.memory_space<vmem>>, %arg3: memref<1x256xf32, #tpu.memory_space<vmem>>, %arg4: memref<256x8xbf16, #tpu.memory_space<vmem>>, %arg5: memref<1x8xf32, #tpu.memory_space<vmem>>, %arg6: memref<16x8xf32, #tpu.memory_space<vmem>>) attributes {dimension_semantics = [#tpu.dimension_semantics<parallel>], iteration_bounds = array<i64: 1>, scalar_prefetch = 0 : i64, scratch_operands = 0 : i64, tpu.core_type = #tpu.core_type<tc>, window_params = [{transform_indices = @transform_0, window_bounds = array<i64: 16, 256>}, {pipeline_mode = #tpu.pipeline_mode<synchronous>, transform_indices = @transform_1, window_bounds = array<i64: 256, 256>}, {pipeline_mode = #tpu.pipeline_mode<synchronous>, transform_indices = @transform_2, window_bounds = array<i64: 1, 256>}, {pipeline_mode = #tpu.pipeline_mode<synchronous>, transform_indices = @transform_3, window_bounds = array<i64: 256, 8>}, {pipeline_mode = #tpu.pipeline_mode<synchronous>, transform_indices = @transform_4, window_bounds = array<i64: 1, 8>}, {transform_indices = @transform_5, window_bounds = array<i64: 16, 8>}]} {
    %c0 = arith.constant 0 : index
    %c0_0 = arith.constant 0 : index
    %0 = vector.load %arg1[%c0, %c0_0] : memref<16x256xf32, #tpu.memory_space<vmem>>, vector<16x256xf32>
    %1 = arith.truncf %0 : vector<16x256xf32> to vector<16x256xbf16>
    %c0_1 = arith.constant 0 : index
    %c0_2 = arith.constant 0 : index
    %2 = vector.load %arg2[%c0_1, %c0_2] : memref<256x256xbf16, #tpu.memory_space<vmem>>, vector<256x256xbf16>
    %cst = arith.constant dense<0.000000e+00> : vector<16x256xf32>
    %3 = tpu.matmul %1, %2, %cst {dimension_numbers = #tpu.dot_dimension_numbers<[1], [0], [0], [1], [0, 0, 1, 1], [], []>} : vector<16x256xbf16>, vector<256x256xbf16>, vector<16x256xf32> -> vector<16x256xf32>
    %c0_3 = arith.constant 0 : index
    %c0_4 = arith.constant 0 : index
    %4 = vector.load %arg3[%c0_3, %c0_4] : memref<1x256xf32, #tpu.memory_space<vmem>>, vector<1x256xf32>
    %5 = vector.broadcast %4 : vector<1x256xf32> to vector<16x256xf32>
    %6 = arith.addf %3, %5 : vector<16x256xf32>
    %cst_5 = arith.constant 0.000000e+00 : f32
    %7 = vector.broadcast %cst_5 : f32 to vector<16x256xf32>
    %8 = arith.maximumf %6, %7 : vector<16x256xf32>
    %9 = arith.truncf %8 : vector<16x256xf32> to vector<16x256xbf16>
    %c0_6 = arith.constant 0 : index
    %c0_7 = arith.constant 0 : index
    %10 = vector.load %arg4[%c0_6, %c0_7] : memref<256x8xbf16, #tpu.memory_space<vmem>>, vector<256x8xbf16>
    %cst_8 = arith.constant dense<0.000000e+00> : vector<16x8xf32>
    %11 = tpu.matmul %9, %10, %cst_8 {dimension_numbers = #tpu.dot_dimension_numbers<[1], [0], [0], [1], [0, 0, 1, 1], [], []>} : vector<16x256xbf16>, vector<256x8xbf16>, vector<16x8xf32> -> vector<16x8xf32>
    %c0_9 = arith.constant 0 : index
    %c0_10 = arith.constant 0 : index
    %12 = vector.load %arg5[%c0_9, %c0_10] : memref<1x8xf32, #tpu.memory_space<vmem>>, vector<1x8xf32>
    %13 = vector.broadcast %12 : vector<1x8xf32> to vector<16x8xf32>
    %14 = arith.addf %11, %13 : vector<16x8xf32>
    %c0_11 = arith.constant 0 : index
    %c0_12 = arith.constant 0 : index
    %15 = vector.load %arg6[%c0_11, %c0_12] : memref<16x8xf32, #tpu.memory_space<vmem>>, vector<16x8xf32>
    tpu.vector_store %arg6[%c0_11, %c0_12], %14 {strides = array<i32>} : memref<16x8xf32, #tpu.memory_space<vmem>>, vector<16x8xf32>,
    return
  }
  func.func @transform_0(%arg0: i32) -> (i32, i32) {
    %c0_i32 = arith.constant 0 : i32
    %c0_i32_0 = arith.constant 0 : i32
    return %arg0, %c0_i32 : i32, i32
  }
  func.func @transform_1(%arg0: i32) -> (i32, i32) {
    %c0_i32 = arith.constant 0 : i32
    %c0_i32_0 = arith.constant 0 : i32
    %c0_i32_1 = arith.constant 0 : i32
    return %c0_i32, %c0_i32_0 : i32, i32
  }
  func.func @transform_2(%arg0: i32) -> (i32, i32) {
    %c0_i32 = arith.constant 0 : i32
    %c0_i32_0 = arith.constant 0 : i32
    %c0_i32_1 = arith.constant 0 : i32
    return %c0_i32, %c0_i32_0 : i32, i32
  }
  func.func @transform_3(%arg0: i32) -> (i32, i32) {
    %c0_i32 = arith.constant 0 : i32
    %c0_i32_0 = arith.constant 0 : i32
    %c0_i32_1 = arith.constant 0 : i32
    return %c0_i32, %c0_i32_0 : i32, i32
  }
  func.func @transform_4(%arg0: i32) -> (i32, i32) {
    %c0_i32 = arith.constant 0 : i32
    %c0_i32_0 = arith.constant 0 : i32
    %c0_i32_1 = arith.constant 0 : i32
    return %c0_i32, %c0_i32_0 : i32, i32
  }
  func.func @transform_5(%arg0: i32) -> (i32, i32) {
    %c0_i32 = arith.constant 0 : i32
    %c0_i32_0 = arith.constant 0 : i32
    return %arg0, %c0_i32 : i32, i32
  }
}

</mosaic_0001>

<bundles_post_ra>
// kernel: tpu_custom_call.1
= control target key start
LH: loop header
LB: loop body
LE: loop exit
PB: predicated region body
PF: predicated region fallthrough
CT: control target
= control target key end

     0   :  { %10 = vsyncpa [#allocation3], 0  ;;  %s640_s18 = smov [#allocation2]   ;;  %s757_s0 = inlined_call_operand.vmem [shape: f32[16,256], index: 0, kind: input, shape index: {}]   ;;  %s758_s1 = inlined_call_operand.hbm [shape: bf16[256,256], index: 1, kind: input, shape index: {}]   ;;  %s759_s2 = inlined_call_operand.vmem [shape: f32[1,256], index: 2, kind: input, shape index: {}]   ;;  %s760_s3 = inlined_call_operand.vmem [shape: bf16[256,8], index: 3, kind: input, shape index: {}]   ;;  %s761_s4 = inlined_call_operand.vmem [shape: f32[1,8], index: 4, kind: input, shape index: {}]   ;;  %s762_s5 = inlined_call_operand.vmem [shape: f32[16,8], index: 5, kind: output, shape index: {}]  }
   0x1   :  { %s18_s19 = sshll.u32 %s640_s18, 4  ;;  %s616_s22 = scalar_lea.hbm %s758_s1, 4096  ;;  %s19_s19 = int_to_ptr.vmem [resolvable:$true] %s18_s19 }
   0x2   :  { %p617_p0 = scmp.ne.s32.totalorder %s758_s1, %s616_s22  ;;  %p620_p1 = scmp.lt.u32.totalorder %s616_s22, %s758_s1 }
   0x4   :  { %p622_p2 = pnand %p620_p1, %p617_p0 }
   0x6   :  { %625 = shalt.err (!%p622_p2)
}
   0x7   :  { %s626_s27 = scalar_lea.vmem %s19_s19, 4096  ;;  %p631_p4 = scmp.lt.s32.totalorder %s19_s19, %s19_s19 }
   0x8   :  { %p627_p3 = scmp.ne.s32.totalorder %s19_s19, %s626_s27  ;;  %p632_p5 = scmp.lt.s32.totalorder %s626_s27, %s626_s27 }
   0xa   :  { %p633_p6 = por %p632_p5, %p631_p4 }
   0xc   :  { %p634_p7 = pnand %p633_p6, %p627_p3 }
   0xe   :  { %637 = shalt.err (!%p634_p7)
}
   0xf   :  { %s641_s28 = smov 128   ;;  %s642_s29 = smov 8  }
  0x10   :  { %24 = dma.hbm_to_vmem [thread:$0]  %s758_s1, 4096, %s19_s19, [#allocation3], %s641_s28, %s641_s28, %s642_s29  }
  0x11   :  { %638 = dma.done.wait [#allocation3], 4096  }
  0x12   :  { %639 = vsyncadd [#allocation3], 4294963200  ;;  %v552_v0 = vld [vmem:[#allocation2 + $0x4] ss:$8 sps:$4 sm:$0xff]   ;;  %v554_v1 = vld [vmem:[#allocation2] ss:$8 sps:$4 sm:$0xff]   ;;  %v75_v54 = vlaneseq }
  0x13   :  { %245 = vmatprep.subr.bf16.mxu0 %v552_v0  ;;  %v555_v2 = vld [vmem:[#allocation2 + $0x14] ss:$8 sps:$4 sm:$0xff]   ;;  %v557_v3 = vld [vmem:[#allocation2 + $0x10] ss:$8 sps:$4 sm:$0xff]   ;;  %v558_v4 = vld [vmem:[#allocation2 + $0x24] ss:$8 sps:$4 sm:$0xff]  }
  0x14   :  { %246 = vmatpush1.bf16.msra.mxu0 %v554_v1  ;;  %v560_v5 = vld [vmem:[#allocation2 + $0x20] ss:$8 sps:$4 sm:$0xff]   ;;  %v561_v6 = vld [vmem:[#allocation2 + $0x34] ss:$8 sps:$4 sm:$0xff]   ;;  %v563_v7 = vld [vmem:[#allocation2 + $0x30] ss:$8 sps:$4 sm:$0xff]  }
  0x15   :  { %247 = vmatprep.subr.bf16.mxu0 %v555_v2  ;;  %v564_v8 = vld [vmem:[#allocation2 + $0x44] ss:$8 sps:$4 sm:$0xff]   ;;  %v566_v9 = vld [vmem:[#allocation2 + $0x40] ss:$8 sps:$4 sm:$0xff]   ;;  %v567_v10 = vld [vmem:[#allocation2 + $0x54] ss:$8 sps:$4 sm:$0xff]  }
  0x16   :  { %v569_v11 = vld [vmem:[#allocation2 + $0x50] ss:$8 sps:$4 sm:$0xff]   ;;  %v570_v12 = vld [vmem:[#allocation2 + $0x64] ss:$8 sps:$4 sm:$0xff]   ;;  %v572_v15 = vld [vmem:[#allocation2 + $0x60] ss:$8 sps:$4 sm:$0xff]  }
  0x17   :  { %v36_v13 = vld [vmem:[%s757_s0 + $0x8] sm:$0xff]  ;;  %v38_v14 = vld [vmem:[%s757_s0 + $0x18] sm:$0xff]  ;;  %v600_v18 = vld [vmem:[%s760_s3 + $0x40] sm:$0xff]   ;;  %v76_v55 = vshrl.u32 %v75_v54, 7  ;;  %vm470_vm0 = vcmask 64512  }
  0x18   :  { %248 = vmatpush1.bf16.msra.mxu0 %v557_v3  ;;  %v573_v16 = vld [vmem:[#allocation2 + $0x74] ss:$8 sps:$4 sm:$0xff]   ;;  %v40_v17 = vpack.c.bf16 %v38_v14, %v36_v13  ;;  %v601_v19 = vld [vmem:[%s760_s3] sm:$0xff]   ;;  %v575_v20 = vld [vmem:[#allocation2 + $0x70] ss:$8 sps:$4 sm:$0xff]   ;;  %527 = vmatprep.subr.bf16.mxu1 %v600_v18 }
  0x19   :  { %249 = vmatprep.subr.bf16.mxu0 %v558_v4  ;;  %v602_v21 = vld [vmem:[%s760_s3 + $0x48] sm:$0xff]   ;;  %528 = vmatpush3.bf16.msra.mxu1 %v601_v19  ;;  %v604_v23 = vld [vmem:[%s760_s3 + $0x50] sm:$0xff]   ;;  %v606_v27 = vld [vmem:[%s760_s3 + $0x58] sm:$0xff]   ;;  %v77_v56 = vsub.s32 0, %v76_v55  ;;  %v81_v58 = vsub.s32 1, %v76_v55 }
  0x1a   :  { %277 = vmatprep.mubr.bf16.mxu0 %v40_v17  ;;  %v603_v22 = vld [vmem:[%s760_s3 + $0x8] sm:$0xff]   ;;  %529 = vmatprep.subr.bf16.mxu1 %v602_v21  ;;  %v605_v26 = vld [vmem:[%s760_s3 + $0x10] sm:$0xff]   ;;  %v607_v30 = vld [vmem:[%s760_s3 + $0x18] sm:$0xff]  }
  0x1b   :  { %v576_v24 = vld [vmem:[#allocation2 + $0x84] ss:$8 sps:$4 sm:$0xff]   ;;  %v578_v25 = vld [vmem:[#allocation2 + $0x80] ss:$8 sps:$4 sm:$0xff]   ;;  %v579_v28 = vld [vmem:[#allocation2 + $0x94] ss:$8 sps:$4 sm:$0xff]  }
  0x1c   :  { %250 = vmatpush1.bf16.msra.mxu0 %v560_v5  ;;  %v581_v29 = vld [vmem:[#allocation2 + $0x90] ss:$8 sps:$4 sm:$0xff]   ;;  %v608_v31 = vld [vmem:[%s760_s3 + $0x60] sm:$0xff]   ;;  %v610_v35 = vld [vmem:[%s760_s3 + $0x68] sm:$0xff]  }
  0x1d   :  { %251 = vmatprep.subr.bf16.mxu0 %v561_v6  ;;  %530 = vmatpush3.bf16.msra.mxu1 %v603_v22  ;;  %v582_v32 = vld [vmem:[#allocation2 + $0xa4] ss:$8 sps:$4 sm:$0xff]   ;;  %v584_v34 = vld [vmem:[#allocation2 + $0xa0] ss:$8 sps:$4 sm:$0xff]   ;;  %v585_v36 = vld [vmem:[#allocation2 + $0xb4] ss:$8 sps:$4 sm:$0xff]  }
  0x1e   :  { %531 = vmatprep.subr.bf16.mxu1 %v604_v23  ;;  %v609_v33 = vld [vmem:[%s760_s3 + $0x20] sm:$0xff]   ;;  %v587_v37 = vld [vmem:[#allocation2 + $0xb0] ss:$8 sps:$4 sm:$0xff]   ;;  %v591_v40 = vld [vmem:[#allocation2 + $0xd4] ss:$8 sps:$4 sm:$0xff]  }
  0x1f   :  { %v588_v38 = vld [vmem:[#allocation2 + $0xc4] ss:$8 sps:$4 sm:$0xff]   ;;  %v590_v39 = vld [vmem:[#allocation2 + $0xc0] ss:$8 sps:$4 sm:$0xff]   ;;  %v593_v41 = vld [vmem:[#allocation2 + $0xd0] ss:$8 sps:$4 sm:$0xff]  }
  0x20   :  { %252 = vmatpush1.bf16.msra.mxu0 %v563_v7  ;;  %v594_v42 = vld [vmem:[#allocation2 + $0xe4] ss:$8 sps:$4 sm:$0xff]   ;;  %v596_v43 = vld [vmem:[#allocation2 + $0xe0] ss:$8 sps:$4 sm:$0xff]   ;;  %v597_v44 = vld [vmem:[#allocation2 + $0xf4] ss:$8 sps:$4 sm:$0xff]  }
  0x21   :  { %253 = vmatprep.subr.bf16.mxu0 %v564_v8  ;;  %532 = vmatpush3.bf16.msra.mxu1 %v605_v26  ;;  %v599_v45 = vld [vmem:[#allocation2 + $0xf0] ss:$8 sps:$4 sm:$0xff]   ;;  %v35_v46 = vld [vmem:[%s757_s0] sm:$0xff]  ;;  %v611_v49 = vld [vmem:[%s760_s3 + $0x28] sm:$0xff]  }
  0x22   :  { %533 = vmatprep.subr.bf16.mxu1 %v606_v27  ;;  %v37_v47 = vld [vmem:[%s757_s0 + $0x10] sm:$0xff]  ;;  %v614_v52 = vld [vmem:[%s760_s3 + $0x78] sm:$0xff]   ;;  %v73_v57 = vld [vmem:[%s759_s2] sm:$0x3] }
  0x23   :  { %v39_v48 = vpack.c.bf16 %v37_v47, %v35_v46  ;;  %v612_v50 = vld [vmem:[%s760_s3 + $0x70] sm:$0xff]   ;;  %v615_v53 = vld [vmem:[%s760_s3 + $0x38] sm:$0xff]   ;;  %v78_v59 = vrot.slane %v73_v57, %v77_v56  ;;  %v82_v60 = vrot.slane %v73_v57, %v81_v58 }
  0x24   :  { %254 = vmatpush1.bf16.msra.mxu0 %v566_v9  ;;  %v613_v51 = vld [vmem:[%s760_s3 + $0x30] sm:$0xff]  }
  0x25   :  { %255 = vmatprep.subr.bf16.mxu0 %v567_v10  ;;  %534 = vmatpush3.bf16.msra.mxu1 %v607_v30 }
  0x26   :  { %535 = vmatprep.subr.bf16.mxu1 %v608_v31 }
  0x28   :  { %256 = vmatpush1.bf16.msra.mxu0 %v569_v11 }
  0x29   :  { %257 = vmatprep.subr.bf16.mxu0 %v570_v12  ;;  %536 = vmatpush3.bf16.msra.mxu1 %v609_v33  ;;  %v510_v12 = vld [vmem:[%s761_s4] ss:$0 sm:$0xff] }
  0x2a   :  { %537 = vmatprep.subr.bf16.mxu1 %v610_v35 }
  0x2c   :  { %258 = vmatpush1.bf16.msra.mxu0 %v572_v15 }
  0x2d   :  { %259 = vmatprep.subr.bf16.mxu0 %v573_v16  ;;  %538 = vmatpush3.bf16.msra.mxu1 %v611_v49 }
  0x2e   :  { %539 = vmatprep.subr.bf16.mxu1 %v612_v50 }
  0x30   :  { %260 = vmatpush1.bf16.msra.mxu0 %v575_v20 }
  0x31   :  { %261 = vmatprep.subr.bf16.mxu0 %v576_v24  ;;  %540 = vmatpush3.bf16.msra.mxu1 %v613_v51 }
  0x32   :  { %541 = vmatprep.subr.bf16.mxu1 %v614_v52 }
  0x34   :  { %262 = vmatpush1.bf16.msra.mxu0 %v578_v25 }
  0x35   :  { %263 = vmatprep.subr.bf16.mxu0 %v579_v28  ;;  %542 = vmatpush3.bf16.msra.mxu1 %v615_v53 }
  0x38   :  { %264 = vmatpush1.bf16.msra.mxu0 %v581_v29 }
  0x39   :  { %265 = vmatprep.subr.bf16.mxu0 %v582_v32 }
  0x3c   :  { %266 = vmatpush1.bf16.msra.mxu0 %v584_v34 }
  0x3d   :  { %267 = vmatprep.subr.bf16.mxu0 %v585_v36 }
  0x40   :  { %268 = vmatpush1.bf16.msra.mxu0 %v587_v37 }
  0x41   :  { %269 = vmatprep.subr.bf16.mxu0 %v588_v38 }
  0x44   :  { %270 = vmatpush1.bf16.msra.mxu0 %v590_v39 }
  0x45   :  { %271 = vmatprep.subr.bf16.mxu0 %v591_v40 }
  0x48   :  { %272 = vmatpush1.bf16.msra.mxu0 %v593_v41 }
  0x49   :  { %273 = vmatprep.subr.bf16.mxu0 %v594_v42 }
  0x4c   :  { %274 = vmatpush1.bf16.msra.mxu0 %v596_v43 }
  0x4d   :  { %275 = vmatprep.subr.bf16.mxu0 %v597_v44 }
  0x50   :  { %276 = vmatpush1.bf16.msra.mxu0 %v599_v45 }
  0x53   :  { %278 = vmatmul.mubr.bf16.vlgmr.msra.gmra.mrb[0].mxu0 %v39_v48 }
 0x126   :  { %v279_v61 = vpop.f32.mrb[0].mxu0 }
 0x127   :  { %v280_v62 = vadd.f32 %v279_v61, %v78_v59  ;;  %v281_v63 = vpop.f32.mrb[1].mxu0 }
 0x128   :  { %v282_v0 = vadd.f32 %v281_v63, %v82_v60  ;;  %v283_v1 = vpop.f32.mrb[2].mxu0 }
 0x129   :  { %v284_v2 = vadd.f32 %v283_v1, %v78_v59  ;;  %v285_v3 = vpop.f32.mrb[3].mxu0  ;;  %v288_v5 = vmax.f32 %v280_v62, 0.0 }
 0x12a   :  { %v286_v4 = vadd.f32 %v285_v3, %v82_v60  ;;  %v289_v7 = vmax.f32 %v282_v0, 0.0 }
 0x12b   :  { %v290_v6 = vmax.f32 %v284_v2, 0.0 }
 0x12c   :  { %v291_v8 = vmax.f32 %v286_v4, 0.0 }
 0x12d   :  { %v292_v9 = vpack.c.bf16 %v290_v6, %v288_v5 }
 0x12e   :  { %v293_v10 = vpack.c.bf16 %v291_v8, %v289_v7 }
 0x130   :  { %461 = vmatprep.mubr.bf16.mxu1 %v293_v10 }
 0x131   :  { %462 = vmatmul.mubr.bf16.vlgmr.msra.gmra.mrb[0].mxu1 %v292_v9 }
 0x204   :  { %v543_v11 = vpop.f32.mrb[0].mxu1 }
 0x205   :  { %v544_v13 = vpop.f32.mrb[1].mxu1 }
 0x206   :  { %v545_v14 = vadd.f32 %v544_v13, %v543_v11  ;;  %v546_v15 = vpop.f32.mrb[2].mxu1 }
 0x207   :  { %v547_v16 = vpop.f32.mrb[3].mxu1 }
 0x208   :  { %v464_v17 = vadd.f32 %v545_v14, %v510_v12  ;;  %v548_v18 = vadd.f32 %v547_v16, %v546_v15 }
 0x20a   :  { %471 = vst.msk [vmem:[%s762_s5] sm:$0xff] %vm470_vm0, %v464_v17  ;;  %v467_v19 = vadd.f32 %v548_v18, %v510_v12 }
 0x20c   :  { %472 = vst.msk [vmem:[%s762_s5 + $0x8] sm:$0xff] %vm470_vm0, %v467_v19 }
 0x20d   :  { %477 = vsyncpa [#allocation3], 1 }

</bundles_post_ra>
